<compile_context>
chip_gen: v7x
topology: tpu7x:2x2x1
jax: 0.10.0
libtpu: 0.0.40
codegen_flags: <defaults>
</compile_context>

<pallas_src>
import jax
import jax.numpy as jnp
from jax.experimental import pallas as pl
from jax.experimental.pallas import tpu as pltpu


def attn_pool_kernel(x_ref, w1_ref, b1_ref, w2r_ref, b2_ref, pooled_ref, wts_ref):
    # x_ref: (TB*S, H)  -- batch-major, sequence-flattened block
    TBS, H = x_ref.shape
    TB, S = wts_ref.shape
    Hh = w1_ref.shape[1]

    # ---- scorer layer 1: one MXU GEMM fed straight from the ref ----
    h = jnp.tanh(
        jnp.dot(x_ref[...], w1_ref[...], preferred_element_type=jnp.float32)
        + b1_ref[...]                                  # (1, Hh) broadcasts over rows
    )                                                  # (TB*S, Hh) f32

    # ---- scorer layer 2 (output width 1): VPU multiply + lane reduce ----
    s_col = jnp.sum(h * w2r_ref[...], axis=-1, keepdims=True) + b2_ref[0]   # (TB*S, 1)

    # ---- softmax over the sequence axis, lane-dense (TB, S) ----
    scores = s_col.reshape(TB, S)                      # tiny relayout (TB*S scalars)
    m = jnp.max(scores, axis=-1, keepdims=True)        # (TB, 1)
    e = jnp.exp(scores - m)                            # (TB, S)
    denom = jnp.sum(e, axis=-1, keepdims=True)         # (TB, 1)
    w = e / denom                                      # exact f32 softmax weights
    wts_ref[...] = w.astype(wts_ref.dtype)

    # ---- weighted pool on the VPU: per-row scale + sublane reduce over S ----
    # (no M=1 MXU matmul; the leading-dim split is a layout no-op when S % 8 == 0)
    x3 = x_ref[...].reshape(TB, S, H)
    pooled = jnp.sum(x3 * w[:, :, None], axis=1)       # (TB, H), f32 accumulate
    pooled_ref[...] = pooled.astype(pooled_ref.dtype)


def _vmem_limit_bytes():
    """Generation-aware scoped-VMEM limit with headroom (v7x has only 64 MiB/TC)."""
    try:
        cap = int(pltpu.get_tpu_info().vmem_capacity_bytes)
    except Exception:
        cap = 64 * 1024 * 1024
    return max(32 * 1024 * 1024, min(cap * 3 // 4, 96 * 1024 * 1024))


def _choose_block_b(B, S, H, itemsize, w1_bytes, vmem_budget):
    """Batch rows per grid step, from a VMEM budget.

    Rough per-row cost: double-buffered x rows (2*S*H*itemsize) plus the live
    f32 intermediates (h is S*H/2 f32, weighted product is S*H f32 -> 6*S*H B).
    W1 is charged at 2x (worst case double-buffered constant block).
    """
    if B <= 8:
        return B                      # single block; block dims equal full array dims
    per_row = S * H * (2 * itemsize + 6) + 64
    avail = max(per_row, vmem_budget - 2 * w1_bytes - (2 << 20))
    rows = max(8, (int(avail // per_row) // 8) * 8)
    # Keep at least 2 (roughly even) batch blocks so dual-TC chips get parallel work.
    cap = (((B + 1) // 2) + 7) // 8 * 8
    return max(8, min(rows, cap))


def attention_pooling(x, w1, b1, w2, b2, *, block_b=None):
    """x: (B, S, H).  w1: (H, H/2), b1: (H/2,), w2: (H/2, 1), b2: (1,).

    Returns (pooled (B, H), weights (B, S, 1)) -- same semantics as the PyTorch
    AttentionPooling.forward.
    """
    B, S, H = x.shape
    Hh = w1.shape[1]
    out_dtype = x.dtype

    # Re-layout small params: biases as f32 row / SMEM scalar, W2 as a lane-dense row.
    b1_row = jnp.reshape(b1, (1, Hh)).astype(jnp.float32)
    w2_row = jnp.reshape(w2, (1, Hh)).astype(jnp.float32)
    b2_sc = jnp.reshape(b2, (1,)).astype(jnp.float32)

    vmem_limit = _vmem_limit_bytes()
    w1_bytes = H * Hh * jnp.dtype(w1.dtype).itemsize
    TB = block_b if block_b is not None else _choose_block_b(
        B, S, H, jnp.dtype(x.dtype).itemsize, w1_bytes, vmem_limit)
    if TB >= B:
        TB = B                               # single block: dims equal full array dims
    else:
        TB = max(8, (TB // 8) * 8)           # multi-block: sublane-tile multiple
        if TB >= B:
            TB = B
    n_blocks = pl.cdiv(B, TB)

    # 2-D presentation of x (free, contiguous).  No host-side padding: the last
    # block may be partial; Pallas masks out-of-range output rows and garbage
    # rows in the padded tail never interact with valid rows.
    x2 = x.reshape(B * S, H)

    grid_spec = pltpu.PrefetchScalarGridSpec(
        num_scalar_prefetch=0,
        grid=(n_blocks,),
        in_specs=[
            pl.BlockSpec((TB * S, H), lambda b: (b, 0)),        # x block (TB batch rows)
            pl.BlockSpec((H, Hh), lambda b: (0, 0)),            # W1 (constant block -> not re-DMA'd)
            pl.BlockSpec((1, Hh), lambda b: (0, 0)),            # b1 row
            pl.BlockSpec((1, Hh), lambda b: (0, 0)),            # W2 as a lane row
            pl.BlockSpec(memory_space=pltpu.MemorySpace.SMEM),  # b2 scalar in SMEM
        ],
        out_specs=(
            pl.BlockSpec((TB, H), lambda b: (b, 0)),            # pooled, lane-dense
            pl.BlockSpec((TB, S), lambda b: (b, 0)),            # weights, lane-dense
        ),
    )

    pooled, wts = pl.pallas_call(
        attn_pool_kernel,
        out_shape=(
            jax.ShapeDtypeStruct((B, H), out_dtype),
            jax.ShapeDtypeStruct((B, S), out_dtype),
        ),
        grid_spec=grid_spec,
        compiler_params=pltpu.CompilerParams(
            dimension_semantics=("parallel",),                  # batch blocks shard across TCs
            vmem_limit_bytes=vmem_limit,
        ),
    )(x2, w1, b1_row, w2_row, b2_sc)

    return pooled, wts.reshape(B, S, 1)   # restore the public (B, S, 1) weights layout


def attention_pooling_ref(x, w1, b1, w2, b2):
    scores = jnp.tanh(x @ w1 + b1) @ w2 + b2          # (B, S, 1)
    w = jax.nn.softmax(scores, axis=1)                # softmax over seq
    return (x * w).sum(axis=1), w


if __name__ == "__main__":
    key = jax.random.PRNGKey(0)

    def make_inputs(k, B, S, H):
        kx, k1, k2, k3, k4 = jax.random.split(k, 5)
        Hh = H // 2
        x = jax.random.normal(kx, (B, S, H), dtype=jnp.float32)
        w1 = jax.random.normal(k1, (H, Hh), dtype=jnp.float32) * 0.1
        b1 = jax.random.normal(k2, (Hh,), dtype=jnp.float32) * 0.1
        w2 = jax.random.normal(k3, (Hh, 1), dtype=jnp.float32) * 0.1
        b2 = jax.random.normal(k4, (1,), dtype=jnp.float32) * 0.1
        return x, w1, b1, w2, b2

    keys = jax.random.split(key, 3)

    def check(x, w1, b1, w2, b2, **kw):
        pooled, wts = attention_pooling(x, w1, b1, w2, b2, **kw)
        jax.block_until_ready((pooled, wts))
        pooled_ref, wts_ref = attention_pooling_ref(x, w1, b1, w2, b2)
        B, S, H = x.shape
        assert pooled.shape == (B, H) and wts.shape == (B, S, 1)
        assert jnp.allclose(pooled, pooled_ref, atol=1e-5, rtol=1e-5)
        assert jnp.allclose(wts, wts_ref, atol=1e-5, rtol=1e-5)

    # Case 1: single block (TB == B), all block dims equal the full array dims.
    check(*make_inputs(keys[0], B=2, S=8, H=32))

    # Case 2: explicit batch tiling with a partial last block (no host-side pad).
    check(*make_inputs(keys[1], B=10, S=16, H=64), block_b=8)

    # Case 3: default block-size heuristic (B > 8), partial last block.
    check(*make_inputs(keys[2], B=12, S=8, H=32))

    print("KERNEL_OK")
</pallas_src>

<mosaic_0001>
module attributes {stable_mosaic.version = 11 : i64} {
  func.func @attn_pool_kernel(%arg0: i32, %arg1: memref<16x32xf32, #tpu.memory_space<vmem>>, %arg2: memref<32x16xf32, #tpu.memory_space<vmem>>, %arg3: memref<1x16xf32, #tpu.memory_space<vmem>>, %arg4: memref<1x16xf32, #tpu.memory_space<vmem>>, %arg5: memref<1xf32, #tpu.memory_space<smem>>, %arg6: memref<2x32xf32, #tpu.memory_space<vmem>>, %arg7: memref<2x8xf32, #tpu.memory_space<vmem>>) attributes {dimension_semantics = [#tpu.dimension_semantics<parallel>], iteration_bounds = array<i64: 1>, scalar_prefetch = 0 : i64, scratch_operands = 0 : i64, tpu.core_type = #tpu.core_type<tc>, window_params = [{transform_indices = @transform_0, window_bounds = array<i64: 16, 32>}, {pipeline_mode = #tpu.pipeline_mode<synchronous>, transform_indices = @transform_1, window_bounds = array<i64: 32, 16>}, {pipeline_mode = #tpu.pipeline_mode<synchronous>, transform_indices = @transform_2, window_bounds = array<i64: 1, 16>}, {pipeline_mode = #tpu.pipeline_mode<synchronous>, transform_indices = @transform_3, window_bounds = array<i64: 1, 16>}, {transform_indices = @transform_4, window_bounds = array<i64: 1>}, {transform_indices = @transform_5, window_bounds = array<i64: 2, 32>}, {transform_indices = @transform_6, window_bounds = array<i64: 2, 8>}]} {
    %c0 = arith.constant 0 : index
    %c0_0 = arith.constant 0 : index
    %0 = vector.load %arg1[%c0, %c0_0] : memref<16x32xf32, #tpu.memory_space<vmem>>, vector<16x32xf32>
    %c0_1 = arith.constant 0 : index
    %c0_2 = arith.constant 0 : index
    %1 = vector.load %arg2[%c0_1, %c0_2] : memref<32x16xf32, #tpu.memory_space<vmem>>, vector<32x16xf32>
    %cst = arith.constant dense<0.000000e+00> : vector<16x16xf32>
    %2 = tpu.matmul %0, %1, %cst {dimension_numbers = #tpu.dot_dimension_numbers<[1], [0], [0], [1], [0, 0, 1, 1], [], []>} : vector<16x32xf32>, vector<32x16xf32>, vector<16x16xf32> -> vector<16x16xf32>
    %c0_3 = arith.constant 0 : index
    %c0_4 = arith.constant 0 : index
    %3 = vector.load %arg3[%c0_3, %c0_4] : memref<1x16xf32, #tpu.memory_space<vmem>>, vector<1x16xf32>
    %4 = vector.broadcast %3 : vector<1x16xf32> to vector<16x16xf32>
    %5 = arith.addf %2, %4 : vector<16x16xf32>
    %6 = math.tanh %5 : vector<16x16xf32>
    %c0_5 = arith.constant 0 : index
    %c0_6 = arith.constant 0 : index
    %7 = vector.load %arg4[%c0_5, %c0_6] : memref<1x16xf32, #tpu.memory_space<vmem>>, vector<1x16xf32>
    %8 = vector.broadcast %7 : vector<1x16xf32> to vector<16x16xf32>
    %9 = arith.mulf %6, %8 : vector<16x16xf32>
    %cst_7 = arith.constant dense<0.000000e+00> : vector<16xf32>
    %10 = vector.multi_reduction <add>, %9, %cst_7 [1] : vector<16x16xf32> to vector<16xf32>
    %11 = vector.shape_cast %10 : vector<16xf32> to vector<16x1xf32>
    %c0_8 = arith.constant 0 : index
    %12 = memref.load %arg5[%c0_8] : memref<1xf32, #tpu.memory_space<smem>>
    %13 = vector.broadcast %12 : f32 to vector<16x1xf32>
    %14 = arith.addf %11, %13 : vector<16x1xf32>
    %15 = vector.shape_cast %14 : vector<16x1xf32> to vector<2x8xf32>
    %cst_9 = arith.constant dense<0xFF800000> : vector<2xf32>
    %16 = vector.multi_reduction <maximumf>, %15, %cst_9 [1] : vector<2x8xf32> to vector<2xf32>
    %17 = vector.shape_cast %16 : vector<2xf32> to vector<2x1xf32>
    %18 = vector.broadcast %17 : vector<2x1xf32> to vector<2x8xf32>
    %19 = arith.subf %15, %18 : vector<2x8xf32>
    %20 = math.exp %19 : vector<2x8xf32>
    %cst_10 = arith.constant dense<0.000000e+00> : vector<2xf32>
    %21 = vector.multi_reduction <add>, %20, %cst_10 [1] : vector<2x8xf32> to vector<2xf32>
    %22 = vector.shape_cast %21 : vector<2xf32> to vector<2x1xf32>
    %23 = vector.broadcast %22 : vector<2x1xf32> to vector<2x8xf32>
    %24 = arith.divf %20, %23 : vector<2x8xf32>
    %c0_11 = arith.constant 0 : index
    %c0_12 = arith.constant 0 : index
    %25 = vector.load %arg7[%c0_11, %c0_12] : memref<2x8xf32, #tpu.memory_space<vmem>>, vector<2x8xf32>
    tpu.vector_store %arg7[%c0_11, %c0_12], %24 {strides = array<i32>} : memref<2x8xf32, #tpu.memory_space<vmem>>, vector<2x8xf32>,
    %c0_13 = arith.constant 0 : index
    %c0_14 = arith.constant 0 : index
    %26 = vector.load %arg1[%c0_13, %c0_14] : memref<16x32xf32, #tpu.memory_space<vmem>>, vector<16x32xf32>
    %27 = vector.shape_cast %26 : vector<16x32xf32> to vector<2x8x32xf32>
    %28 = vector.shape_cast %24 : vector<2x8xf32> to vector<2x8x1xf32>
    %29 = vector.broadcast %28 : vector<2x8x1xf32> to vector<2x8x32xf32>
    %30 = arith.mulf %27, %29 : vector<2x8x32xf32>
    %cst_15 = arith.constant dense<0.000000e+00> : vector<2x32xf32>
    %31 = vector.multi_reduction <add>, %30, %cst_15 [1] : vector<2x8x32xf32> to vector<2x32xf32>
    %c0_16 = arith.constant 0 : index
    %c0_17 = arith.constant 0 : index
    %32 = vector.load %arg6[%c0_16, %c0_17] : memref<2x32xf32, #tpu.memory_space<vmem>>, vector<2x32xf32>
    tpu.vector_store %arg6[%c0_16, %c0_17], %31 {strides = array<i32>} : memref<2x32xf32, #tpu.memory_space<vmem>>, vector<2x32xf32>,
    return
  }
  func.func @transform_0(%arg0: i32) -> (i32, i32) {
    %c0_i32 = arith.constant 0 : i32
    %c0_i32_0 = arith.constant 0 : i32
    return %arg0, %c0_i32 : i32, i32
  }
  func.func @transform_1(%arg0: i32) -> (i32, i32) {
    %c0_i32 = arith.constant 0 : i32
    %c0_i32_0 = arith.constant 0 : i32
    %c0_i32_1 = arith.constant 0 : i32
    return %c0_i32, %c0_i32_0 : i32, i32
  }
  func.func @transform_2(%arg0: i32) -> (i32, i32) {
    %c0_i32 = arith.constant 0 : i32
    %c0_i32_0 = arith.constant 0 : i32
    %c0_i32_1 = arith.constant 0 : i32
    return %c0_i32, %c0_i32_0 : i32, i32
  }
  func.func @transform_3(%arg0: i32) -> (i32, i32) {
    %c0_i32 = arith.constant 0 : i32
    %c0_i32_0 = arith.constant 0 : i32
    %c0_i32_1 = arith.constant 0 : i32
    return %c0_i32, %c0_i32_0 : i32, i32
  }
  func.func @transform_4(%arg0: i32) -> i32 {
    %c0_i32 = arith.constant 0 : i32
    %c0_i32_0 = arith.constant 0 : i32
    return %c0_i32 : i32
  }
  func.func @transform_5(%arg0: i32) -> (i32, i32) {
    %c0_i32 = arith.constant 0 : i32
    %c0_i32_0 = arith.constant 0 : i32
    return %arg0, %c0_i32 : i32, i32
  }
  func.func @transform_6(%arg0: i32) -> (i32, i32) {
    %c0_i32 = arith.constant 0 : i32
    %c0_i32_0 = arith.constant 0 : i32
    return %arg0, %c0_i32 : i32, i32
  }
}

</mosaic_0001>

<bundles_post_ra>
// kernel: tpu_custom_call.1
= control target key start
LH: loop header
LB: loop body
LE: loop exit
PB: predicated region body
PF: predicated region fallthrough
CT: control target
= control target key end

     0   :  { %13 = vsyncpa [#allocation4], 0  ;;  %vm38_vm0 = vcmask 261120   ;;  %s489_s0 = inlined_call_operand.vmem [shape: f32[16,32], index: 0, kind: input, shape index: {}]   ;;  %s490_s1 = inlined_call_operand.vmem [shape: f32[32,16], index: 1, kind: input, shape index: {}]   ;;  %s491_s2 = inlined_call_operand.vmem [shape: f32[1,16], index: 2, kind: input, shape index: {}]   ;;  %s492_s3 = inlined_call_operand.vmem [shape: f32[1,16], index: 3, kind: input, shape index: {}]   ;;  %s493_s4 = inlined_call_operand.<no memory space> [shape: f32[1], index: 4, kind: input, shape index: {}]   ;;  %s494_s5 = inlined_call_operand.hbm [shape: f32[2,32], index: 5, kind: output, shape index: {0}]   ;;  %s495_s6 = inlined_call_operand.hbm [shape: f32[2,8], index: 6, kind: output, shape index: {1}]  }
   0x1   :  { %v27_v0 = vld [vmem:[%s490_s1] sm:$0xff]  ;;  %v28_v1 = vld [vmem:[%s490_s1 + $0x8] sm:$0xff]  ;;  %v29_v2 = vld [vmem:[%s490_s1 + $0x10] sm:$0xff] }
   0x2   :  { %v308_v3 = vpack.c.bf16 %v28_v1, %v27_v0  ;;  %v30_v4 = vld [vmem:[%s490_s1 + $0x18] sm:$0xff]  ;;  %v434_v5 = vld [vmem:[%s489_s0] sm:$0xff] }
   0x3   :  { %v312_v6 = vpack.c.bf16 %v30_v4, %v29_v2  ;;  %305 = vmatprep.mubr.msk.f32.mxu0 %vm38_vm0, %v434_v5 }
   0x4   :  { %14 = vsyncpa [#allocation6], 0  ;;  %309 = vmatprep.subr.bf16.mxu0 %v308_v3  ;;  %v441_v7 = vld [vmem:[%s489_s0 + $0x8] sm:$0xff]  ;;  %v287_v8 = vld [vmem:[%s491_s2] ss:$0 sm:$0xff]  ;;  %vm131_vm1 = vcmask 130048   ;;  %v144_v20 = vlaneseq  ;;  %v139_v23 = vstv %s493_s4 }
   0x5   :  { %311 = vmatpush3.bf16.msra.mxu0 %v308_v3  ;;  %v290_v13 = vld [vmem:[%s492_s3] ss:$0 sm:$0xff]  ;;  %vm154_vm2 = vcmask 1041409   ;;  %vm157_vm3 = vcmask 58368   ;;  %v381_v33 = vmov 0   ;;  %s382_s3 = smov [#allocation5]  }
   0x6   :  { %313 = vmatprep.subr.bf16.mxu0 %v312_v6  ;;  %v145_v21 = vand.u32 127, %v144_v20  ;;  %v147_v22 = vshrl.u32 %v144_v20, 7  ;;  %320 = vset.pattern.permute.xlu0 %v381_v33  ;;  %s275_s4 = sshll.u32 %s382_s3, 4  ;;  %s276_s4 = int_to_ptr.vmem [resolvable:$true] %s275_s4 }
   0x7   :  { %319 = vset.pattern.permute.xlu1 %v381_v33  ;;  %s333_s12 = scalar_lea.vmem %s276_s4, 32  ;;  %p338_p1 = scmp.lt.s32.totalorder %s276_s4, %s276_s4 }
   0x8   :  { %v148_v25 = vsub.s32 %v145_v21, %v147_v22  ;;  %v164_v34 = vsub.s32 0, %v147_v22  ;;  %v168_v35 = vsub.s32 1, %v147_v22  ;;  %p334_p0 = scmp.ne.s32.totalorder %s276_s4, %s333_s12  ;;  %p339_p2 = scmp.lt.s32.totalorder %s333_s12, %s333_s12 }
   0x9   :  { %315 = vmatpush3.bf16.msra.mxu0 %v312_v6 }
   0xa   :  { %p340_p3 = por %p339_p2, %p338_p1 }
   0xc   :  { %306 = vmatmul.mubr.msk.f32.vlgmr.msra.gmra.mrb[0].mxu0 %vm38_vm0, %v441_v7  ;;  %p341_p4 = pnand %p340_p3, %p334_p0 }
  0xdf   :  { %v307_v9 = vpop.f32.mrb[0].mxu0 }
  0xe0   :  { %v117_v10 = vadd.f32 %v307_v9, %v287_v8  ;;  %v111_v11 = vpop.f32.mrb[1].mxu0 }
  0xe1   :  { %v112_v12 = vadd.f32 %v287_v8, %v111_v11 }
  0xe2   :  { %321 = vtanh.f32 %v117_v10 }
  0xe3   :  { %323 = vtanh.f32 %v112_v12 }
  0xec   :  { %v322_v14 = vpop.eup %321 }
  0xed   :  { %v324_v15 = vpop.eup %323  ;;  %v130_v18 = vmul.f32 %v322_v14, %v290_v13 }
  0xee   :  { %v129_v16 = vmul.f32 %v324_v15, %v290_v13 }
  0xef   :  { %v135_v19 = vsel %vm131_vm1, %v130_v18, 0.0 }
  0xf0   :  { %v132_v17 = vsel %vm131_vm1, %v129_v16, 0.0 }
  0xf1   :  { %133 = vadd.xlane.f32.xlu0 %v132_v17 }
  0xf5   :  { %136 = vadd.xlane.f32.xlu0 %v135_v19 }
 0x17e   :  { %v134_v24 = vpop.xlane.xlu0 %133 }
 0x17f   :  { %v140_v26 = vadd.f32 %v139_v23, %v134_v24 }
 0x181   :  { %v149_v29 = vrot.slane %v140_v26, %v148_v25 }
 0x182   :  { %v137_v27 = vpop.xlane.xlu0 %136 }
 0x183   :  { %v141_v28 = vadd.f32 %v139_v23, %v137_v27 }
 0x185   :  { %v153_v30 = vrot.slane %v141_v28, %v148_v25 }
 0x187   :  { %v155_v31 = vsel %vm154_vm2, %v153_v30, %v149_v29 }
 0x188   :  { %v158_v32 = vsel %vm157_vm3, %v155_v31, -inf }
 0x189   :  { %159 = vmax.xlane.f32.xlu1 %v158_v32 }
 0x216   :  { %v160_v36 = vpop.xlane.xlu1 %159 }
 0x217   :  { %v165_v37 = vrot.slane %v160_v36, %v164_v34  ;;  %v169_v38 = vrot.slane %v160_v36, %v168_v35 }
 0x219   :  { %v172_v39 = vsub.f32 %v140_v26, %v165_v37  ;;  %v173_v40 = vsub.f32 %v141_v28, %v169_v38 }
 0x21b   :  { %v174_v41 = vmul.f32 1.442695, %v172_v39  ;;  %v176_v42 = vmul.f32 1.442695, %v173_v40 }
 0x21d   :  { %325 = vpow2.f32 %v174_v41 }
 0x21e   :  { %327 = vpow2.f32 %v176_v42 }
 0x227   :  { %v326_v43 = vpop.eup %325 }
 0x228   :  { %v328_v44 = vpop.eup %327  ;;  %181 = vperm.xlu1 %319, %v326_v43  }
 0x229   :  { %184 = vperm.xlu0 %320, %v328_v44  }
 0x2a7   :  { %v182_v45 = vpop.permute.xlu1 %181 }
 0x2a8   :  { %v185_v46 = vpop.permute.xlu0 %184  ;;  %v189_v47 = vrot.slane %v182_v45, %v148_v25 }
 0x2a9   :  { %v193_v48 = vrot.slane %v185_v46, %v148_v25 }
 0x2ab   :  { %v194_v49 = vsel %vm154_vm2, %v193_v48, %v189_v47 }
 0x2ac   :  { %v196_v50 = vsel %vm157_vm3, %v194_v49, 0.0 }
 0x2ad   :  { %197 = vadd.xlane.f32.xlu1 %v196_v50 }
 0x33a   :  { %v198_v51 = vpop.xlane.xlu1 %197 }
 0x33b   :  { %v203_v52 = vrot.slane %v198_v51, %v164_v34  ;;  %v207_v53 = vrot.slane %v198_v51, %v168_v35 }
 0x33d   :  { %329 = vrcp.f32 %v203_v52 }
 0x33e   :  { %331 = vrcp.f32 %v207_v53 }
 0x347   :  { %v330_v54 = vpop.eup %329 }
 0x348   :  { %v211_v55 = vmul.f32 %v330_v54, %v326_v43  ;;  %v332_v56 = vpop.eup %331 }
 0x349   :  { %v213_v57 = vmul.f32 %v332_v56, %v328_v44 }
 0x34a   :  { %217 = vperm.xlu0 %320, %v211_v55  }
 0x34e   :  { %220 = vperm.xlu0 %320, %v213_v57  }
 0x3c9   :  { %v218_v58 = vpop.permute.xlu0 %217 }
 0x3ca   :  { %v237_v59 = vmul.f32 %v218_v58, %v434_v5  ;;  %v225_v63 = vrot.slane %v218_v58, %v148_v25 }
 0x3cc   :  { %v239_v60 = vsel %vm38_vm0, %v237_v59, 0.0 }
 0x3cd   :  { %v240_v61 = vrot.slane %v239_v60, 4  ;;  %v221_v62 = vpop.permute.xlu0 %220 }
 0x3ce   :  { %v229_v0 = vrot.slane %v221_v62, %v148_v25  ;;  %v238_v1 = vmul.f32 %v221_v62, %v441_v7 }
 0x3cf   :  { %v241_v2 = vadd.f32 %v240_v61, %v239_v60 }
 0x3d0   :  { %v246_v3 = vsel %vm38_vm0, %v238_v1, 0.0  ;;  %v230_v4 = vsel %vm154_vm2, %v229_v0, %v225_v63 }
 0x3d1   :  { %v242_v6 = vrot.slane %v241_v2, 2  ;;  %v247_v8 = vrot.slane %v246_v3, 4  ;;  %232 = vst.msk [vmem:[#allocation5] sm:$0x3] %vm157_vm3, %v230_v4 }
 0x3d2   :  { %344 = shalt.err (!%p341_p4)
}
 0x3d3   :  { %s345_s15 = scalar_lea.hbm %s495_s6, 32 }
 0x3d4   :  { %p346_p5 = scmp.ne.s32.totalorder %s495_s6, %s345_s15  ;;  %p349_p6 = scmp.lt.u32.totalorder %s345_s15, %s495_s6 }
 0x3d6   :  { %p351_p7 = pnand %p349_p6, %p346_p5 }
 0x3d8   :  { %354 = shalt.err (!%p351_p7)
}
 0x3d9   :  { %278 = dma.vmem_to_hbm [thread:$0]  %s276_s4, 32, %s495_s6, [#allocation6]   ;;  %v243_v5 = vadd.f32 %v242_v6, %v241_v2  ;;  %v248_v7 = vadd.f32 %v247_v8, %v246_v3  ;;  %vm257_vm4 = vcmask 254976  }
 0x3da   :  { %s383_s22 = smov [#allocation3]  }
 0x3db   :  { %v249_v9 = vrot.slane %v248_v7, 2  ;;  %v244_v11 = vrot.slane %v243_v5, 1  ;;  %s265_s23 = sshll.u32 %s383_s22, 4  ;;  %s266_s23 = int_to_ptr.vmem [resolvable:$true] %s265_s23 }
 0x3dc   :  { %s355_s24 = scalar_lea.vmem %s266_s23, 32  ;;  %p360_p9 = scmp.lt.s32.totalorder %s266_s23, %s266_s23 }
 0x3dd   :  { %v250_v10 = vadd.f32 %v249_v9, %v248_v7  ;;  %v245_v13 = vadd.f32 %v244_v11, %v243_v5  ;;  %p356_p8 = scmp.ne.s32.totalorder %s266_s23, %s355_s24  ;;  %p361_p10 = scmp.lt.s32.totalorder %s355_s24, %s355_s24 }
 0x3df   :  { %v251_v12 = vrot.slane %v250_v10, 1  ;;  %p362_p11 = por %p361_p10, %p360_p9 }
 0x3e1   :  { %v252_v14 = vadd.f32 %v251_v12, %v250_v10  ;;  %p363_p12 = pnand %p362_p11, %p356_p8 }
 0x3e3   :  { %v255_v15 = vsel %vm154_vm2, %v252_v14, %v245_v13 }
 0x3e4   :  { %258 = vst.msk [vmem:[#allocation3] sm:$0x3] %vm257_vm4, %v255_v15 }
 0x3e5   :  { %366 = shalt.err (!%p363_p12)
}
 0x3e6   :  { %s367_s26 = scalar_lea.hbm %s494_s5, 32 }
 0x3e7   :  { %p368_p13 = scmp.ne.s32.totalorder %s494_s5, %s367_s26  ;;  %p371_p0 = scmp.lt.u32.totalorder %s367_s26, %s494_s5 }
 0x3e9   :  { %p373_p1 = pnand %p371_p0, %p368_p13 }
 0x3eb   :  { %376 = shalt.err (!%p373_p1)
}
 0x3ec   :  { %268 = dma.vmem_to_hbm [thread:$0]  %s266_s23, 32, %s494_s5, [#allocation4]  }
 0x3ed   :  { %377 = dma.done.wait [#allocation4], 32  }
 0x3ee   :  { %378 = vsyncadd [#allocation4], 4294967264 }
 0x3ef   :  { %379 = dma.done.wait [#allocation6], 32  }
 0x3f0   :  { %380 = vsyncadd [#allocation6], 4294967264 }
 0x3f1   :  { %285 = vsyncpa [#allocation4], 1 }
 0x3f2   :  { %286 = vsyncpa [#allocation6], 1 }

</bundles_post_ra>
